<compile_context>
chip_gen: v5e
topology: v5e:2x2
jax: 0.10.0
libtpu: 0.0.40
codegen_flags: <defaults>
</compile_context>

<pallas_src>
from functools import partial

import jax
import jax.numpy as jnp
from jax.experimental import pallas as pl
from jax.experimental.pallas import tpu as pltpu

BN_EPS = 1e-5
HIDDEN = [128, 256, 64, 16]          # logical hidden widths


def nn5_kernel(x_ref, w_ref, vec_ref, o_ref):
    # w_ref layout (bf16, lane width 256), with d_in_pad = w_ref.shape[0] - 384:
    #   rows [0, d_in_pad)            cols [0,128)   : w1  (d_in x 128)
    #   rows [R1, R1+128)             cols [0,256)   : w2  (128 x 256)
    #   rows [R2, R2+256)             cols [0,128)   : w3  (256 x 64, zero-padded)
    #   rows [R2, R2+128)             cols [128,256) : w4  (64  x 16, zero-padded)
    #   rows [R2+128, R2+256)         cols [128,256) : w5  (16  x d_out, zero-padded)
    # vec_ref rows (f32, 256 lanes, zero-padded past real width):
    #   0:b1 1:g1 2:be1  3:b2 4:g2 5:be2  6:b3 7:g3 8:be3  9:b4 10:g4 11:be4  12:b5
    d_in_pad = w_ref.shape[0] - 384          # static
    R1 = d_in_pad
    R2 = R1 + 128

    B = x_ref.shape[0]
    inv_b = 1.0 / B                          # static python constant

    x = x_ref[...]                           # (B, d_in_pad) f32
    vecs = vec_ref[...]                      # (16, 256) f32 — load slab once

    def bdot(h, w_bf16):
        # bf16 x bf16 MXU matmul with f32 accumulation; BN math stays f32.
        return jnp.dot(h.astype(jnp.bfloat16), w_bf16,
                       preferred_element_type=jnp.float32)

    def relu_bn(z, gamma, beta):
        # ReLU + training-mode BatchNorm1d (batch mean, biased variance, eps=1e-5),
        # two-pass variance for numerical safety.
        h = jnp.maximum(z, 0.0)
        mean = jnp.sum(h, axis=0, keepdims=True) * inv_b
        c = h - mean
        var = jnp.sum(c * c, axis=0, keepdims=True) * inv_b
        inv = jax.lax.rsqrt(var + BN_EPS)            # EUP
        return c * (inv * gamma) + beta              # one mul+add per element

    # fc1 -> relu -> bn1   (out 128)
    h = bdot(x, w_ref[0:R1, 0:128]) + vecs[0:1, :128]
    h = relu_bn(h, vecs[1:2, :128], vecs[2:3, :128])

    # fc2 -> relu -> bn2   (out 256)
    h = bdot(h, w_ref[R1:R1 + 128, :]) + vecs[3:4, :]
    h = relu_bn(h, vecs[4:5, :], vecs[5:6, :])

    # fc3 -> relu -> bn3   (out 64, lane-padded to 128)
    h = bdot(h, w_ref[R2:R2 + 256, 0:128]) + vecs[6:7, :128]
    h = relu_bn(h, vecs[7:8, :128], vecs[8:9, :128])

    # fc4 -> relu -> bn4   (out 16, lane-padded to 128)
    h = bdot(h, w_ref[R2:R2 + 128, 128:256]) + vecs[9:10, :128]
    h = relu_bn(h, vecs[10:11, :128], vecs[11:12, :128])

    # fc5 (out d_out, lane-padded to 128) — full-width unmasked store
    y = bdot(h, w_ref[R2 + 128:R2 + 256, 128:256]) + vecs[12:13, :128]
    o_ref[...] = y


@partial(jax.jit, static_argnames=("d_out",))
def nn5_forward(x, w_slab, vecs, d_out):
    """x: [B, d_in] f32; w_slab: packed bf16 weights; vecs: (16,256) f32."""
    B = x.shape[0]
    d_in_pad = w_slab.shape[0] - 384
    if x.shape[1] != d_in_pad:
        x = jnp.pad(x, ((0, 0), (0, d_in_pad - x.shape[1])))

    flops = 2 * B * (d_in_pad * 128 + 128 * 256 + 256 * 128 + 128 * 128 + 128 * 128)
    bytes_accessed = (x.size * 4 + w_slab.size * 2 + vecs.size * 4 + B * 128 * 4)

    out_padded = pl.pallas_call(
        nn5_kernel,
        out_shape=jax.ShapeDtypeStruct((B, 128), jnp.float32),
        in_specs=[pl.BlockSpec(memory_space=pltpu.MemorySpace.VMEM)] * 3,
        out_specs=pl.BlockSpec(memory_space=pltpu.MemorySpace.VMEM),
        cost_estimate=pl.CostEstimate(
            flops=flops, transcendentals=640, bytes_accessed=bytes_accessed),
    )(x, w_slab, vecs)
    # Slice of the lane-padded output stays inside the same jit.
    return out_padded[:, :d_out]


def init_params(key, d_in, d_out):
    """PyTorch-default-style init: Linear uniform +/- 1/sqrt(fan_in); BN gamma=1, beta=0.
    Returns the UNPADDED flat list (w,b,g,be for layers 1-4; w,b for layer 5)."""
    dims = [d_in] + HIDDEN + [d_out]
    flat = []
    for li in range(5):
        fan_in, fan_out = dims[li], dims[li + 1]
        key, kw, kb = jax.random.split(key, 3)
        bound = 1.0 / jnp.sqrt(jnp.float32(fan_in))
        w = jax.random.uniform(kw, (fan_in, fan_out), jnp.float32, -bound, bound)  # [in,out]
        b = jax.random.uniform(kb, (1, fan_out), jnp.float32, -bound, bound)
        flat.extend([w, b])
        if li < 4:
            flat.extend([jnp.ones((1, fan_out), jnp.float32),
                         jnp.zeros((1, fan_out), jnp.float32)])
    return flat


def pack_params(flat, d_in, d_out):
    """Pack all five weights into ONE bf16 (d_in_pad+384, 256) slab and all per-layer
    vectors (bias/gamma/beta, bias5) into ONE f32 (16, 256) slab."""
    d_in_pad = ((d_in + 7) // 8) * 8
    R1 = d_in_pad
    R2 = R1 + 128
    total_rows = R2 + 256

    w1, w2, w3, w4, w5 = flat[0], flat[4], flat[8], flat[12], flat[16]

    slab = jnp.zeros((total_rows, 256), jnp.float32)
    slab = slab.at[0:d_in, 0:128].set(w1)                       # (d_in, 128)
    slab = slab.at[R1:R1 + 128, 0:256].set(w2)                  # (128, 256)
    slab = slab.at[R2:R2 + 256, 0:64].set(w3)                   # (256, 64)
    slab = slab.at[R2:R2 + 64, 128:128 + 16].set(w4)            # (64, 16)
    slab = slab.at[R2 + 128:R2 + 144, 128:128 + d_out].set(w5)  # (16, d_out)
    w_slab = slab.astype(jnp.bfloat16)

    dims_out = HIDDEN + [d_out]
    vec_rows = []

    def padrow(v, width):
        return jnp.zeros((1, 256), jnp.float32).at[:, :width].set(v)

    idx = 0
    for li in range(5):
        fout = dims_out[li]
        b = flat[idx + 1]
        vec_rows.append(padrow(b, fout))
        if li < 4:
            g, be = flat[idx + 2], flat[idx + 3]
            vec_rows.append(padrow(g, fout))
            vec_rows.append(padrow(be, fout))
            idx += 4
        else:
            idx += 2
    vecs = jnp.concatenate(vec_rows + [jnp.zeros((3, 256), jnp.float32)], axis=0)  # (16,256)
    return w_slab, vecs


def reference_forward(x, flat):
    """Plain-JAX reference with PyTorch training-mode BN semantics (two-pass variance).
    Matmul operands are rounded to bf16 (matching the kernel's bf16-weight MXU path),
    with f32 accumulation and all other math in f32."""
    def bdot(h, w):
        return (h.astype(jnp.bfloat16).astype(jnp.float32)
                @ w.astype(jnp.bfloat16).astype(jnp.float32))

    h = x
    idx = 0
    for _ in range(4):
        w, b, g, be = flat[idx:idx + 4]
        idx += 4
        h = jnp.maximum(bdot(h, w) + b, 0.0)
        mean = jnp.mean(h, axis=0, keepdims=True)
        var = jnp.mean((h - mean) ** 2, axis=0, keepdims=True)
        h = (h - mean) * jax.lax.rsqrt(var + BN_EPS) * g + be
    w5, b5 = flat[idx:idx + 2]
    return bdot(h, w5) + b5


if __name__ == "__main__":
    key = jax.random.PRNGKey(0)
    k_x, k_p = jax.random.split(key)

    batch, d_in, d_out = 16, 32, 8   # train_x.size(-1)=32, train_y.size(-1)=8
    x = jax.random.normal(k_x, (batch, d_in), jnp.float32)

    flat = init_params(k_p, d_in, d_out)          # unpadded params (reference)
    w_slab, vecs = pack_params(flat, d_in, d_out)  # packed bf16 weights + f32 vec slab

    out = nn5_forward(x, w_slab, vecs, d_out=d_out)
    out = jax.block_until_ready(out)

    ref = reference_forward(x, flat)
    assert out.shape == (batch, d_out)
    assert jnp.allclose(out, ref, atol=1e-3, rtol=1e-3), "mismatch vs reference"

    # TODO(synk): BatchNorm running_mean/running_var side-effect updates are not
    # modeled (forward output uses batch statistics, matching train-mode forward).
    print("KERNEL_OK")
</pallas_src>

<mosaic_0001>
module attributes {stable_mosaic.version = 11 : i64} {
  func.func @nn5_kernel(%arg0: memref<16x32xf32, #tpu.memory_space<vmem>>, %arg1: memref<416x256xbf16, #tpu.memory_space<vmem>>, %arg2: memref<16x256xf32, #tpu.memory_space<vmem>>, %arg3: memref<16x128xf32, #tpu.memory_space<vmem>>) attributes {dimension_semantics = [], scalar_prefetch = 0 : i64, scratch_operands = 0 : i64, tpu.core_type = #tpu.core_type<tc>} {
    %c0 = arith.constant 0 : index
    %c0_0 = arith.constant 0 : index
    %0 = vector.load %arg0[%c0, %c0_0] : memref<16x32xf32, #tpu.memory_space<vmem>>, vector<16x32xf32>
    %c0_1 = arith.constant 0 : index
    %c0_2 = arith.constant 0 : index
    %1 = vector.load %arg2[%c0_1, %c0_2] : memref<16x256xf32, #tpu.memory_space<vmem>>, vector<16x256xf32>
    %c0_3 = arith.constant 0 : index
    %c0_4 = arith.constant 0 : index
    %2 = vector.load %arg1[%c0_3, %c0_4] : memref<416x256xbf16, #tpu.memory_space<vmem>>, vector<32x128xbf16>
    %3 = arith.truncf %0 : vector<16x32xf32> to vector<16x32xbf16>
    %cst = arith.constant dense<0.000000e+00> : vector<16x128xf32>
    %4 = tpu.matmul %3, %2, %cst {dimension_numbers = #tpu.dot_dimension_numbers<[1], [0], [0], [1], [0, 0, 1, 1], [], []>} : vector<16x32xbf16>, vector<32x128xbf16>, vector<16x128xf32> -> vector<16x128xf32>
    %5 = vector.extract_strided_slice %1 {offsets = [0, 0], sizes = [1, 128], strides = [1, 1]} : vector<16x256xf32> to vector<1x128xf32>
    %6 = vector.broadcast %5 : vector<1x128xf32> to vector<16x128xf32>
    %7 = arith.addf %4, %6 : vector<16x128xf32>
    %8 = vector.extract_strided_slice %1 {offsets = [1, 0], sizes = [1, 128], strides = [1, 1]} : vector<16x256xf32> to vector<1x128xf32>
    %9 = vector.extract_strided_slice %1 {offsets = [2, 0], sizes = [1, 128], strides = [1, 1]} : vector<16x256xf32> to vector<1x128xf32>
    %cst_5 = arith.constant 0.000000e+00 : f32
    %10 = vector.broadcast %cst_5 : f32 to vector<16x128xf32>
    %11 = arith.maximumf %7, %10 : vector<16x128xf32>
    %cst_6 = arith.constant dense<0.000000e+00> : vector<128xf32>
    %12 = vector.multi_reduction <add>, %11, %cst_6 [0] : vector<16x128xf32> to vector<128xf32>
    %13 = vector.shape_cast %12 : vector<128xf32> to vector<1x128xf32>
    %cst_7 = arith.constant 6.250000e-02 : f32
    %14 = vector.broadcast %cst_7 : f32 to vector<1x128xf32>
    %15 = arith.mulf %13, %14 : vector<1x128xf32>
    %16 = vector.broadcast %15 : vector<1x128xf32> to vector<16x128xf32>
    %17 = arith.subf %11, %16 : vector<16x128xf32>
    %18 = arith.mulf %17, %17 : vector<16x128xf32>
    %cst_8 = arith.constant dense<0.000000e+00> : vector<128xf32>
    %19 = vector.multi_reduction <add>, %18, %cst_8 [0] : vector<16x128xf32> to vector<128xf32>
    %20 = vector.shape_cast %19 : vector<128xf32> to vector<1x128xf32>
    %cst_9 = arith.constant 6.250000e-02 : f32
    %21 = vector.broadcast %cst_9 : f32 to vector<1x128xf32>
    %22 = arith.mulf %20, %21 : vector<1x128xf32>
    %cst_10 = arith.constant 9.99999974E-6 : f32
    %23 = vector.broadcast %cst_10 : f32 to vector<1x128xf32>
    %24 = arith.addf %22, %23 : vector<1x128xf32>
    %25 = math.rsqrt %24 : vector<1x128xf32>
    %26 = arith.mulf %25, %8 : vector<1x128xf32>
    %27 = vector.broadcast %26 : vector<1x128xf32> to vector<16x128xf32>
    %28 = arith.mulf %17, %27 : vector<16x128xf32>
    %29 = vector.broadcast %9 : vector<1x128xf32> to vector<16x128xf32>
    %30 = arith.addf %28, %29 : vector<16x128xf32>
    %c32 = arith.constant 32 : index
    %c0_11 = arith.constant 0 : index
    %31 = vector.load %arg1[%c32, %c0_11] : memref<416x256xbf16, #tpu.memory_space<vmem>>, vector<128x256xbf16>
    %32 = arith.truncf %30 : vector<16x128xf32> to vector<16x128xbf16>
    %cst_12 = arith.constant dense<0.000000e+00> : vector<16x256xf32>
    %33 = tpu.matmul %32, %31, %cst_12 {dimension_numbers = #tpu.dot_dimension_numbers<[1], [0], [0], [1], [0, 0, 1, 1], [], []>} : vector<16x128xbf16>, vector<128x256xbf16>, vector<16x256xf32> -> vector<16x256xf32>
    %34 = vector.extract_strided_slice %1 {offsets = [3, 0], sizes = [1, 256], strides = [1, 1]} : vector<16x256xf32> to vector<1x256xf32>
    %35 = vector.broadcast %34 : vector<1x256xf32> to vector<16x256xf32>
    %36 = arith.addf %33, %35 : vector<16x256xf32>
    %37 = vector.extract_strided_slice %1 {offsets = [4, 0], sizes = [1, 256], strides = [1, 1]} : vector<16x256xf32> to vector<1x256xf32>
    %38 = vector.extract_strided_slice %1 {offsets = [5, 0], sizes = [1, 256], strides = [1, 1]} : vector<16x256xf32> to vector<1x256xf32>
    %cst_13 = arith.constant 0.000000e+00 : f32
    %39 = vector.broadcast %cst_13 : f32 to vector<16x256xf32>
    %40 = arith.maximumf %36, %39 : vector<16x256xf32>
    %cst_14 = arith.constant dense<0.000000e+00> : vector<256xf32>
    %41 = vector.multi_reduction <add>, %40, %cst_14 [0] : vector<16x256xf32> to vector<256xf32>
    %42 = vector.shape_cast %41 : vector<256xf32> to vector<1x256xf32>
    %cst_15 = arith.constant 6.250000e-02 : f32
    %43 = vector.broadcast %cst_15 : f32 to vector<1x256xf32>
    %44 = arith.mulf %42, %43 : vector<1x256xf32>
    %45 = vector.broadcast %44 : vector<1x256xf32> to vector<16x256xf32>
    %46 = arith.subf %40, %45 : vector<16x256xf32>
    %47 = arith.mulf %46, %46 : vector<16x256xf32>
    %cst_16 = arith.constant dense<0.000000e+00> : vector<256xf32>
    %48 = vector.multi_reduction <add>, %47, %cst_16 [0] : vector<16x256xf32> to vector<256xf32>
    %49 = vector.shape_cast %48 : vector<256xf32> to vector<1x256xf32>
    %cst_17 = arith.constant 6.250000e-02 : f32
    %50 = vector.broadcast %cst_17 : f32 to vector<1x256xf32>
    %51 = arith.mulf %49, %50 : vector<1x256xf32>
    %cst_18 = arith.constant 9.99999974E-6 : f32
    %52 = vector.broadcast %cst_18 : f32 to vector<1x256xf32>
    %53 = arith.addf %51, %52 : vector<1x256xf32>
    %54 = math.rsqrt %53 : vector<1x256xf32>
    %55 = arith.mulf %54, %37 : vector<1x256xf32>
    %56 = vector.broadcast %55 : vector<1x256xf32> to vector<16x256xf32>
    %57 = arith.mulf %46, %56 : vector<16x256xf32>
    %58 = vector.broadcast %38 : vector<1x256xf32> to vector<16x256xf32>
    %59 = arith.addf %57, %58 : vector<16x256xf32>
    %c160 = arith.constant 160 : index
    %c0_19 = arith.constant 0 : index
    %60 = vector.load %arg1[%c160, %c0_19] : memref<416x256xbf16, #tpu.memory_space<vmem>>, vector<256x128xbf16>
    %61 = arith.truncf %59 : vector<16x256xf32> to vector<16x256xbf16>
    %cst_20 = arith.constant dense<0.000000e+00> : vector<16x128xf32>
    %62 = tpu.matmul %61, %60, %cst_20 {dimension_numbers = #tpu.dot_dimension_numbers<[1], [0], [0], [1], [0, 0, 1, 1], [], []>} : vector<16x256xbf16>, vector<256x128xbf16>, vector<16x128xf32> -> vector<16x128xf32>
    %63 = vector.extract_strided_slice %1 {offsets = [6, 0], sizes = [1, 128], strides = [1, 1]} : vector<16x256xf32> to vector<1x128xf32>
    %64 = vector.broadcast %63 : vector<1x128xf32> to vector<16x128xf32>
    %65 = arith.addf %62, %64 : vector<16x128xf32>
    %66 = vector.extract_strided_slice %1 {offsets = [7, 0], sizes = [1, 128], strides = [1, 1]} : vector<16x256xf32> to vector<1x128xf32>
    %67 = vector.extract_strided_slice %1 {offsets = [8, 0], sizes = [1, 128], strides = [1, 1]} : vector<16x256xf32> to vector<1x128xf32>
    %cst_21 = arith.constant 0.000000e+00 : f32
    %68 = vector.broadcast %cst_21 : f32 to vector<16x128xf32>
    %69 = arith.maximumf %65, %68 : vector<16x128xf32>
    %cst_22 = arith.constant dense<0.000000e+00> : vector<128xf32>
    %70 = vector.multi_reduction <add>, %69, %cst_22 [0] : vector<16x128xf32> to vector<128xf32>
    %71 = vector.shape_cast %70 : vector<128xf32> to vector<1x128xf32>
    %cst_23 = arith.constant 6.250000e-02 : f32
    %72 = vector.broadcast %cst_23 : f32 to vector<1x128xf32>
    %73 = arith.mulf %71, %72 : vector<1x128xf32>
    %74 = vector.broadcast %73 : vector<1x128xf32> to vector<16x128xf32>
    %75 = arith.subf %69, %74 : vector<16x128xf32>
    %76 = arith.mulf %75, %75 : vector<16x128xf32>
    %cst_24 = arith.constant dense<0.000000e+00> : vector<128xf32>
    %77 = vector.multi_reduction <add>, %76, %cst_24 [0] : vector<16x128xf32> to vector<128xf32>
    %78 = vector.shape_cast %77 : vector<128xf32> to vector<1x128xf32>
    %cst_25 = arith.constant 6.250000e-02 : f32
    %79 = vector.broadcast %cst_25 : f32 to vector<1x128xf32>
    %80 = arith.mulf %78, %79 : vector<1x128xf32>
    %cst_26 = arith.constant 9.99999974E-6 : f32
    %81 = vector.broadcast %cst_26 : f32 to vector<1x128xf32>
    %82 = arith.addf %80, %81 : vector<1x128xf32>
    %83 = math.rsqrt %82 : vector<1x128xf32>
    %84 = arith.mulf %83, %66 : vector<1x128xf32>
    %85 = vector.broadcast %84 : vector<1x128xf32> to vector<16x128xf32>
    %86 = arith.mulf %75, %85 : vector<16x128xf32>
    %87 = vector.broadcast %67 : vector<1x128xf32> to vector<16x128xf32>
    %88 = arith.addf %86, %87 : vector<16x128xf32>
    %c160_27 = arith.constant 160 : index
    %c128 = arith.constant 128 : index
    %89 = vector.load %arg1[%c160_27, %c128] : memref<416x256xbf16, #tpu.memory_space<vmem>>, vector<128x128xbf16>
    %90 = arith.truncf %88 : vector<16x128xf32> to vector<16x128xbf16>
    %cst_28 = arith.constant dense<0.000000e+00> : vector<16x128xf32>
    %91 = tpu.matmul %90, %89, %cst_28 {dimension_numbers = #tpu.dot_dimension_numbers<[1], [0], [0], [1], [0, 0, 1, 1], [], []>} : vector<16x128xbf16>, vector<128x128xbf16>, vector<16x128xf32> -> vector<16x128xf32>
    %92 = vector.extract_strided_slice %1 {offsets = [9, 0], sizes = [1, 128], strides = [1, 1]} : vector<16x256xf32> to vector<1x128xf32>
    %93 = vector.broadcast %92 : vector<1x128xf32> to vector<16x128xf32>
    %94 = arith.addf %91, %93 : vector<16x128xf32>
    %95 = vector.extract_strided_slice %1 {offsets = [10, 0], sizes = [1, 128], strides = [1, 1]} : vector<16x256xf32> to vector<1x128xf32>
    %96 = vector.extract_strided_slice %1 {offsets = [11, 0], sizes = [1, 128], strides = [1, 1]} : vector<16x256xf32> to vector<1x128xf32>
    %cst_29 = arith.constant 0.000000e+00 : f32
    %97 = vector.broadcast %cst_29 : f32 to vector<16x128xf32>
    %98 = arith.maximumf %94, %97 : vector<16x128xf32>
    %cst_30 = arith.constant dense<0.000000e+00> : vector<128xf32>
    %99 = vector.multi_reduction <add>, %98, %cst_30 [0] : vector<16x128xf32> to vector<128xf32>
    %100 = vector.shape_cast %99 : vector<128xf32> to vector<1x128xf32>
    %cst_31 = arith.constant 6.250000e-02 : f32
    %101 = vector.broadcast %cst_31 : f32 to vector<1x128xf32>
    %102 = arith.mulf %100, %101 : vector<1x128xf32>
    %103 = vector.broadcast %102 : vector<1x128xf32> to vector<16x128xf32>
    %104 = arith.subf %98, %103 : vector<16x128xf32>
    %105 = arith.mulf %104, %104 : vector<16x128xf32>
    %cst_32 = arith.constant dense<0.000000e+00> : vector<128xf32>
    %106 = vector.multi_reduction <add>, %105, %cst_32 [0] : vector<16x128xf32> to vector<128xf32>
    %107 = vector.shape_cast %106 : vector<128xf32> to vector<1x128xf32>
    %cst_33 = arith.constant 6.250000e-02 : f32
    %108 = vector.broadcast %cst_33 : f32 to vector<1x128xf32>
    %109 = arith.mulf %107, %108 : vector<1x128xf32>
    %cst_34 = arith.constant 9.99999974E-6 : f32
    %110 = vector.broadcast %cst_34 : f32 to vector<1x128xf32>
    %111 = arith.addf %109, %110 : vector<1x128xf32>
    %112 = math.rsqrt %111 : vector<1x128xf32>
    %113 = arith.mulf %112, %95 : vector<1x128xf32>
    %114 = vector.broadcast %113 : vector<1x128xf32> to vector<16x128xf32>
    %115 = arith.mulf %104, %114 : vector<16x128xf32>
    %116 = vector.broadcast %96 : vector<1x128xf32> to vector<16x128xf32>
    %117 = arith.addf %115, %116 : vector<16x128xf32>
    %c288 = arith.constant 288 : index
    %c128_35 = arith.constant 128 : index
    %118 = vector.load %arg1[%c288, %c128_35] : memref<416x256xbf16, #tpu.memory_space<vmem>>, vector<128x128xbf16>
    %119 = arith.truncf %117 : vector<16x128xf32> to vector<16x128xbf16>
    %cst_36 = arith.constant dense<0.000000e+00> : vector<16x128xf32>
    %120 = tpu.matmul %119, %118, %cst_36 {dimension_numbers = #tpu.dot_dimension_numbers<[1], [0], [0], [1], [0, 0, 1, 1], [], []>} : vector<16x128xbf16>, vector<128x128xbf16>, vector<16x128xf32> -> vector<16x128xf32>
    %121 = vector.extract_strided_slice %1 {offsets = [12, 0], sizes = [1, 128], strides = [1, 1]} : vector<16x256xf32> to vector<1x128xf32>
    %122 = vector.broadcast %121 : vector<1x128xf32> to vector<16x128xf32>
    %123 = arith.addf %120, %122 : vector<16x128xf32>
    %c0_37 = arith.constant 0 : index
    %c0_38 = arith.constant 0 : index
    %124 = vector.load %arg3[%c0_37, %c0_38] : memref<16x128xf32, #tpu.memory_space<vmem>>, vector<16x128xf32>
    tpu.vector_store %arg3[%c0_37, %c0_38], %123 {strides = array<i32>} : memref<16x128xf32, #tpu.memory_space<vmem>>, vector<16x128xf32>,
    return
  }
}

</mosaic_0001>

<bundles_post_ra>
// kernel: nn5_forward.1
= control target key start
LH: loop header
LB: loop body
LE: loop exit
PB: predicated region body
PF: predicated region fallthrough
CT: control target
= control target key end

     0   :  { %8 = vsyncpa [#allocation3], 0  ;;  %s1188_s0 = inlined_call_operand.hbm [shape: f32[16,32], index: 0, kind: input, shape index: {}]   ;;  %s1189_s1 = inlined_call_operand.hbm [shape: bf16[416,256], index: 1, kind: input, shape index: {}]   ;;  %s1190_s2 = inlined_call_operand.hbm [shape: f32[16,256], index: 2, kind: input, shape index: {}]   ;;  %s1191_s3 = inlined_call_operand.vmem [shape: f32[16,128], index: 3, kind: output, shape index: {}]  }
   0x1   :  { %9 = vsyncpa [#allocation5], 0  ;;  %s27_s14 = sshll.u32 %s1189_s1, 4  ;;  %s1101_s15 = smov [#allocation4]   ;;  %s28_s14 = int_to_ptr.hbm [resolvable:$true] %s27_s14 }
   0x2   :  { %s29_s16 = sshll.u32 %s1101_s15, 4  ;;  %s14_s19 = sshll.u32 %s1188_s0, 4  ;;  %s30_s16 = int_to_ptr.vmem [resolvable:$true] %s29_s16  ;;  %s15_s19 = int_to_ptr.hbm [resolvable:$true] %s14_s19 }
   0x3   :  { %s1102_s20 = smov 128   ;;  %s1103_s21 = smov 8  }
   0x4   :  { %35 = dma.hbm_to_vmem [thread:$0]  %s28_s14, 6656, %s30_s16, [#allocation5], %s1102_s20, %s1102_s20, %s1103_s21  }
   0x5   :  { %s1104_s22 = smov [#allocation2]   ;;  %s40_s26 = sshll.u32 %s1190_s2, 4  ;;  %s41_s26 = int_to_ptr.hbm [resolvable:$true] %s40_s26 }
   0x6   :  { %s16_s23 = sshll.u32 %s1104_s22, 4  ;;  %s1105_s1 = smov [#allocation6]   ;;  %s17_s23 = int_to_ptr.vmem [resolvable:$true] %s16_s23 }
   0x7   :  { %22 = dma.hbm_to_vmem [thread:$0]  %s15_s19, 256, %s17_s23, [#allocation3], %s1102_s20, %s1102_s20, %s1103_s21  }
   0x8   :  { %s42_s27 = sshll.u32 %s1105_s1, 4  ;;  %s1106_s28 = smov 256   ;;  %s43_s27 = int_to_ptr.vmem [resolvable:$true] %s42_s27 }
   0x9   :  { %s1107_s29 = smov 16  }
   0xa   :  { %48 = dma.hbm_to_vmem [thread:$0]  %s41_s26, 512, %s43_s27, [#allocation5], %s1106_s28, %s1106_s28, %s1107_s29  }
   0xb   :  { %1097 = dma.done.wait [#allocation3], 256  }
   0xc   :  { %1098 = vsyncadd [#allocation3], 4294967040 }
   0xd   :  { %1099 = dma.done.wait [#allocation5], 7168  }
   0xe   :  { %1100 = vsyncadd [#allocation5], 4294960128  ;;  %v763_v0 = vld [vmem:[#allocation4 + $0x10] sm:$0xf]  ;;  %v959_v1 = vld [vmem:[#allocation4 + $0x14] sm:$0xf0] }
   0xf   :  { %v759_v2 = vld [vmem:[#allocation4] sm:$0xf]  ;;  %v764_v3 = vor.u32 %v959_v1, %v763_v0  ;;  %v958_v4 = vld [vmem:[#allocation4 + $0x4] sm:$0xf0]  ;;  %v62_v6 = vld [vmem:[#allocation2] sm:$0xff]  ;;  %vm85_vm0 = vcmask 261120  }
  0x10   :  { %v760_v5 = vor.u32 %v958_v4, %v759_v2  ;;  %v63_v7 = vld [vmem:[#allocation2 + $0x8] sm:$0xff]  ;;  %v1137_v9 = vld [vmem:[#allocation6] sm:$0xff]  ;;  %v824_v18 = vld [vmem:[#allocation4 + $0x90] sm:$0xf] }
  0x11   :  { %95 = vmatpush.bf16.msra.mxu0 %v764_v3  ;;  %v71_v8 = vpack.c.bf16 %v63_v7, %v62_v6  ;;  %v72_v11 = vperm.slane %v1137_v9, 0  ;;  %v975_v19 = vld [vmem:[#allocation4 + $0x94] sm:$0xf0]  ;;  %v974_v20 = vld [vmem:[#allocation4 + $0x94] sm:$0xf] }
  0x12   :  { %v825_v21 = vor.u32 %v975_v19, %v824_v18  ;;  %v826_v22 = vld [vmem:[#allocation4 + $0x98] sm:$0xf0]  ;;  %v816_v26 = vld [vmem:[#allocation4 + $0x80] sm:$0xf]  ;;  %v973_v27 = vld [vmem:[#allocation4 + $0x84] sm:$0xf0] }
  0x13   :  { %v829_v24 = vor.u32 %v974_v20, %v826_v22  ;;  %v972_v28 = vld [vmem:[#allocation4 + $0x84] sm:$0xf]  ;;  %v817_v29 = vor.u32 %v973_v27, %v816_v26  ;;  %v818_v30 = vld [vmem:[#allocation4 + $0x88] sm:$0xf0]  ;;  %v808_v34 = vld [vmem:[#allocation4 + $0x70] sm:$0xf] }
  0x14   :  { %242 = vmatpush.bf16.msra.mxu1 %v825_v21  ;;  %v821_v32 = vor.u32 %v972_v28, %v818_v30  ;;  %v971_v35 = vld [vmem:[#allocation4 + $0x74] sm:$0xf0]  ;;  %v970_v36 = vld [vmem:[#allocation4 + $0x74] sm:$0xf]  ;;  %v810_v38 = vld [vmem:[#allocation4 + $0x78] sm:$0xf0] }
  0x15   :  { %96 = vmatpush.bf16.msra.mxu0 %v760_v5  ;;  %256 = vmatpush.bf16.msra.mxu2 %v829_v24  ;;  %v809_v37 = vor.u32 %v971_v35, %v808_v34  ;;  %v813_v40 = vor.u32 %v970_v36, %v810_v38  ;;  %v800_v42 = vld [vmem:[#allocation4 + $0x60] sm:$0xf]  ;;  %v969_v43 = vld [vmem:[#allocation4 + $0x64] sm:$0xf0]  ;;  %v968_v44 = vld [vmem:[#allocation4 + $0x64] sm:$0xf] }
  0x16   :  { %v801_v45 = vor.u32 %v969_v43, %v800_v42  ;;  %v802_v46 = vld [vmem:[#allocation4 + $0x68] sm:$0xf0]  ;;  %v792_v51 = vld [vmem:[#allocation4 + $0x50] sm:$0xf]  ;;  %v967_v52 = vld [vmem:[#allocation4 + $0x54] sm:$0xf0] }
  0x17   :  { %v805_v48 = vor.u32 %v968_v44, %v802_v46  ;;  %v966_v53 = vld [vmem:[#allocation4 + $0x54] sm:$0xf]  ;;  %v793_v54 = vor.u32 %v967_v52, %v792_v51  ;;  %v794_v55 = vld [vmem:[#allocation4 + $0x58] sm:$0xf0]  ;;  %v784_v60 = vld [vmem:[#allocation4 + $0x40] sm:$0xf] }
  0x18   :  { %765 = vmatmul.msk.bf16.vlgmr.msra.gmra.mxu0 %vm85_vm0, %v71_v8  ;;  %243 = vmatpush.bf16.msra.mxu1 %v817_v29  ;;  %v797_v58 = vor.u32 %v966_v53, %v794_v55  ;;  %v965_v61 = vld [vmem:[#allocation4 + $0x44] sm:$0xf0]  ;;  %v964_v62 = vld [vmem:[#allocation4 + $0x44] sm:$0xf]  ;;  %v786_v0 = vld [vmem:[#allocation4 + $0x48] sm:$0xf0] }
  0x19   :  { %257 = vmatpush.bf16.msra.mxu2 %v821_v32  ;;  %v785_v63 = vor.u32 %v965_v61, %v784_v60  ;;  %v789_v2 = vor.u32 %v964_v62, %v786_v0  ;;  %v776_v4 = vld [vmem:[#allocation4 + $0x30] sm:$0xf]  ;;  %v963_v5 = vld [vmem:[#allocation4 + $0x34] sm:$0xf0]  ;;  %v962_v6 = vld [vmem:[#allocation4 + $0x34] sm:$0xf] }
  0x1a   :  { %v777_v7 = vor.u32 %v963_v5, %v776_v4  ;;  %v778_v8 = vld [vmem:[#allocation4 + $0x38] sm:$0xf0]  ;;  %v140_v32 = vperm.slane %v1137_v9, 2  ;;  %v983_v51 = vld [vmem:[#allocation4 + $0x114] sm:$0xf0] }
  0x1b   :  { %v982_v60 = vld [vmem:[#allocation4 + $0x104] sm:$0xf0]  ;;  %v892_v0 = vld [vmem:[#allocation4 + $0x190] sm:$0xf] }
  0x1c   :  { %244 = vmatpush.bf16.msra.mxu1 %v809_v37  ;;  %v852_v5 = vld [vmem:[#allocation4 + $0xf0] sm:$0xf] }
  0x1d   :  { %258 = vmatpush.bf16.msra.mxu2 %v813_v40  ;;  %v1143_v40 = vld [vmem:[#allocation6 + $0x8] sm:$0xff] }
  0x1e   :  { %v161_v44 = vperm.slane %v1143_v40, 3 }
  0x20   :  { %245 = vmatpush.bf16.msra.mxu1 %v801_v45 }
  0x21   :  { %259 = vmatpush.bf16.msra.mxu2 %v805_v48 }
  0x24   :  { %246 = vmatpush.bf16.msra.mxu1 %v793_v54 }
  0x25   :  { %260 = vmatpush.bf16.msra.mxu2 %v797_v58 }
  0x28   :  { %247 = vmatpush.bf16.msra.mxu1 %v785_v63 }
  0x29   :  { %261 = vmatpush.bf16.msra.mxu2 %v789_v2 }
  0x2c   :  { %248 = vmatpush.bf16.msra.mxu1 %v777_v7 }
  0x95   :  { %v98_v10 = vpop.f32.mrf.mxu0 }
  0x96   :  { %v99_v12 = vadd.f32 %v98_v10, %v72_v11 }
  0x98   :  { %v103_v15 = vmax.f32 %v99_v12, 0.0 }
  0x9d   :  { %v100_v13 = vpop.f32.mrf.mxu0 }
  0x9e   :  { %v101_v14 = vadd.f32 %v100_v13, %v72_v11  ;;  %v781_v11 = vor.u32 %v962_v6, %v778_v8  ;;  %v768_v13 = vld [vmem:[#allocation4 + $0x20] sm:$0xf]  ;;  %v981_v6 = vld [vmem:[#allocation4 + $0xf4] sm:$0xf0] }
  0x9f   :  { %v853_v7 = vor.u32 %v981_v6, %v852_v5 }
  0xa0   :  { %v104_v16 = vmax.f32 %v101_v14, 0.0  ;;  %262 = vmatpush.bf16.msra.mxu2 %v781_v11  ;;  %v961_v14 = vld [vmem:[#allocation4 + $0x24] sm:$0xf0]  ;;  %v888_v11 = vld [vmem:[#allocation4 + $0x180] sm:$0xf] }
  0xa2   :  { %v105_v17 = vadd.f32 %v104_v16, %v103_v15 }
  0xa4   :  { %v106_v23 = vrot.slane %v105_v17, 4 }
  0xa6   :  { %v107_v25 = vadd.f32 %v106_v23, %v105_v17  ;;  %v770_v17 = vld [vmem:[#allocation4 + $0x28] sm:$0xf0] }
  0xa8   :  { %v108_v31 = vrot.slane %v107_v25, 2 }
  0xaa   :  { %v109_v33 = vadd.f32 %v108_v31, %v107_v25 }
  0xac   :  { %v110_v39 = vrot.slane %v109_v33, 1 }
  0xae   :  { %v111_v41 = vadd.f32 %v110_v39, %v109_v33  ;;  %v160_v39 = vperm.slane %v1137_v9, 3 }
  0xb0   :  { %v112_v47 = vmul.f32 0.0625, %v111_v41 }
  0xb2   :  { %v113_v49 = vsub.f32 %v103_v15, %v112_v47  ;;  %v114_v50 = vsub.f32 %v104_v16, %v112_v47  ;;  %v960_v15 = vld [vmem:[#allocation4 + $0x24] sm:$0xf]  ;;  %v769_v16 = vor.u32 %v961_v14, %v768_v13 }
  0xb3   :  { %v773_v19 = vor.u32 %v960_v15, %v770_v17  ;;  %v980_v17 = vld [vmem:[#allocation4 + $0xe4] sm:$0xf0] }
  0xb4   :  { %v115_v56 = vmul.f32 %v113_v49, %v113_v49  ;;  %v116_v57 = vmul.f32 %v114_v50, %v114_v50  ;;  %249 = vmatpush.bf16.msra.mxu1 %v769_v16  ;;  %v848_v16 = vld [vmem:[#allocation4 + $0xe0] sm:$0xf] }
  0xb5   :  { %263 = vmatpush.bf16.msra.mxu2 %v773_v19 }
  0xb6   :  { %v117_v59 = vadd.f32 %v116_v57, %v115_v56 }
  0xb8   :  { %v118_v1 = vrot.slane %v117_v59, 4 }
  0xba   :  { %v119_v3 = vadd.f32 %v118_v1, %v117_v59  ;;  %v856_v59 = vld [vmem:[#allocation4 + $0x100] sm:$0xf]  ;;  %v991_v1 = vld [vmem:[#allocation4 + $0x194] sm:$0xf0] }
  0xbb   :  { %v857_v61 = vor.u32 %v982_v60, %v856_v59  ;;  %v893_v2 = vor.u32 %v991_v1, %v892_v0 }
  0xbc   :  { %v120_v10 = vrot.slane %v119_v3, 2 }
  0xbd   :  { %495 = vmatpush.bf16.msrb.mxu0 %v893_v2  ;;  %v868_v2 = vld [vmem:[#allocation4 + $0x130] sm:$0xf] }
  0xbe   :  { %v121_v12 = vadd.f32 %v120_v10, %v119_v3 }
  0xc0   :  { %v122_v18 = vrot.slane %v121_v12, 1 }
  0xc2   :  { %v123_v20 = vadd.f32 %v122_v18, %v121_v12  ;;  %v990_v12 = vld [vmem:[#allocation4 + $0x184] sm:$0xf0]  ;;  %v849_v18 = vor.u32 %v980_v17, %v848_v16 }
  0xc3   :  { %v889_v13 = vor.u32 %v990_v12, %v888_v11  ;;  %v984_v11 = vld [vmem:[#allocation4 + $0x124] sm:$0xf0] }
  0xc4   :  { %v124_v21 = vmul.f32 0.0625, %v123_v20 }
  0xc5   :  { %496 = vmatpush.bf16.msrb.mxu0 %v889_v13 }
  0xc6   :  { %v125_v22 = vadd.f32 1e-05, %v124_v21  ;;  %v884_v21 = vld [vmem:[#allocation4 + $0x170] sm:$0xf] }
  0xc8   :  { %1015 = vrsqrt.f32 %v125_v22  ;;  %vm132_vm2 = vweird.f32 %v125_v22 }
  0xce   :  { %v1016_v23 = vpop.eup %1015 }
  0xcf   :  { %v127_v24 = vmul.f32 %v1016_v23, %v125_v22  ;;  %vm133_vm1 = vweird.f32 %v1016_v23  ;;  %v989_v22 = vld [vmem:[#allocation4 + $0x174] sm:$0xf0] }
  0xd0   :  { %vm134_vm3 = vmor %vm132_vm2, %vm133_vm1 }
  0xd1   :  { %v128_v25 = vmul.f32 %v1016_v23, %v127_v24 }
  0xd3   :  { %v129_v26 = vmul.f32 0.5, %v128_v25 }
  0xd5   :  { %v130_v27 = vsub.f32 1.5, %v129_v26 }
  0xd7   :  { %v131_v28 = vmul.f32 %v1016_v23, %v130_v27  ;;  %v844_v27 = vld [vmem:[#allocation4 + $0xd0] sm:$0xf] }
  0xd9   :  { %v135_v29 = vsel %vm134_vm3, %v1016_v23, %v131_v28  ;;  %v885_v23 = vor.u32 %v989_v22, %v884_v21  ;;  %v979_v28 = vld [vmem:[#allocation4 + $0xd4] sm:$0xf0] }
  0xda   :  { %v136_v30 = vmul.f32 %v135_v29, %v1137_v9  ;;  %v845_v29 = vor.u32 %v979_v28, %v844_v27 }
  0xdb   :  { %497 = vmatpush.bf16.msrb.mxu0 %v885_v23 }
  0xdc   :  { %v137_v31 = vperm.slane %v136_v30, 1 }
  0xde   :  { %v139_v33 = vmul.f32 %v137_v31, %v114_v50  ;;  %v138_v34 = vmul.f32 %v137_v31, %v113_v49  ;;  %v860_v50 = vld [vmem:[#allocation4 + $0x110] sm:$0xf] }
  0xdf   :  { %v861_v53 = vor.u32 %v983_v51, %v860_v50  ;;  %v836_v51 = vld [vmem:[#allocation4 + $0xb0] sm:$0xf] }
  0xe0   :  { %v141_v35 = vadd.f32 %v140_v32, %v138_v34  ;;  %v142_v36 = vadd.f32 %v140_v32, %v139_v33  ;;  %v880_v33 = vld [vmem:[#allocation4 + $0x160] sm:$0xf]  ;;  %v988_v34 = vld [vmem:[#allocation4 + $0x164] sm:$0xf0] }
  0xe1   :  { %481 = vmatpush.bf16.msra.mxu3 %v861_v53 }
  0xe2   :  { %v159_v37 = vpack.c.bf16 %v142_v36, %v141_v35  ;;  %v881_v35 = vor.u32 %v988_v34, %v880_v33  ;;  %v344_v34 = vperm.slane %v1137_v9, 5 }
  0xe4   :  { %250 = vmatmul.bf16.vlgmr.msra.gmra.mxu1 %v159_v37  ;;  %264 = vmatmul.bf16.vlgmr.msra.gmra.mxu2 %v159_v37 }
  0xe5   :  { %482 = vmatpush.bf16.msra.mxu3 %v857_v61  ;;  %498 = vmatpush.bf16.msrb.mxu0 %v881_v35  ;;  %v832_v61 = vld [vmem:[#allocation4 + $0xa0] sm:$0xf] }
  0xe9   :  { %483 = vmatpush.bf16.msra.mxu3 %v853_v7 }
  0xed   :  { %484 = vmatpush.bf16.msra.mxu3 %v849_v18 }
  0xf1   :  { %485 = vmatpush.bf16.msra.mxu3 %v845_v29 }
 0x161   :  { %v251_v38 = vpop.f32.mrf.mxu1 }
 0x162   :  { %v252_v42 = vadd.f32 %v251_v38, %v160_v39  ;;  %v840_v38 = vld [vmem:[#allocation4 + $0xc0] sm:$0xf] }
 0x164   :  { %v270_v46 = vmax.f32 %v252_v42, 0.0 }
 0x167   :  { %v265_v41 = vpop.f32.mrf.mxu2 }
 0x168   :  { %v1146_v48 = vadd.f32 %v265_v41, %v161_v44 }
 0x169   :  { %v253_v43 = vpop.f32.mrf.mxu1 }
 0x16a   :  { %v254_v45 = vadd.f32 %v253_v43, %v160_v39  ;;  %v271_v56 = vmax.f32 %v1146_v48, 0.0  ;;  %v978_v39 = vld [vmem:[#allocation4 + $0xc4] sm:$0xf0] }
 0x16b   :  { %v841_v41 = vor.u32 %v978_v39, %v840_v38 }
 0x16c   :  { %v272_v47 = vmax.f32 %v254_v45, 0.0  ;;  %v876_v45 = vld [vmem:[#allocation4 + $0x150] sm:$0xf] }
 0x16d   :  { %486 = vmatpush.bf16.msra.mxu3 %v841_v41 }
 0x16e   :  { %v274_v49 = vadd.f32 %v272_v47, %v270_v46 }
 0x16f   :  { %v267_v52 = vpop.f32.mrf.mxu2 }
 0x170   :  { %v275_v54 = vrot.slane %v274_v49, 4  ;;  %v268_v55 = vadd.f32 %v267_v52, %v161_v44  ;;  %v977_v52 = vld [vmem:[#allocation4 + $0xb4] sm:$0xf0] }
 0x171   :  { %v837_v53 = vor.u32 %v977_v52, %v836_v51 }
 0x172   :  { %v276_v57 = vadd.f32 %v275_v54, %v274_v49  ;;  %v273_v58 = vmax.f32 %v268_v55, 0.0 }
 0x173   :  { %487 = vmatpush.bf16.msra.mxu3 %v837_v53  ;;  %v384_v53 = vperm.slane %v1137_v9, 6 }
 0x174   :  { %v277_v62 = vrot.slane %v276_v57, 2  ;;  %v281_v63 = vadd.f32 %v273_v58, %v271_v56 }
 0x176   :  { %v278_v3 = vadd.f32 %v277_v62, %v276_v57  ;;  %v282_v4 = vrot.slane %v281_v63, 4  ;;  %v986_v57 = vld [vmem:[#allocation4 + $0x144] sm:$0xf0] }
 0x177   :  { %v976_v62 = vld [vmem:[#allocation4 + $0xa4] sm:$0xf0] }
 0x178   :  { %v279_v8 = vrot.slane %v278_v3, 1  ;;  %v283_v10 = vadd.f32 %v282_v4, %v281_v63  ;;  %v833_v63 = vor.u32 %v976_v62, %v832_v61  ;;  %v924_v61 = vld [vmem:[#allocation4 + $0x114] sm:$0xf]  ;;  %v999_v62 = vld [vmem:[#allocation4 + $0x118] sm:$0xf0] }
 0x17a   :  { %v280_v14 = vadd.f32 %v279_v8, %v278_v3  ;;  %v284_v15 = vrot.slane %v283_v10, 2  ;;  %v985_v3 = vld [vmem:[#allocation4 + $0x134] sm:$0xf0]  ;;  %488 = vmatpush.bf16.msra.mxu3 %v833_v63 }
 0x17b   :  { %v869_v4 = vor.u32 %v985_v3, %v868_v2  ;;  %v998_v2 = vld [vmem:[#allocation4 + $0x108] sm:$0xf0] }
 0x17c   :  { %v288_v19 = vmul.f32 0.0625, %v280_v14  ;;  %v285_v20 = vadd.f32 %v284_v15, %v283_v10  ;;  %v864_v10 = vld [vmem:[#allocation4 + $0x120] sm:$0xf] }
 0x17d   :  { %v865_v12 = vor.u32 %v984_v11, %v864_v10 }
 0x17e   :  { %v1149_v24 = vsub.f32 %v270_v46, %v288_v19  ;;  %v1151_v25 = vsub.f32 %v272_v47, %v288_v19  ;;  %v286_v26 = vrot.slane %v285_v20, 1  ;;  %v987_v46 = vld [vmem:[#allocation4 + $0x154] sm:$0xf0] }
 0x17f   :  { %v877_v47 = vor.u32 %v987_v46, %v876_v45  ;;  %v345_v45 = vperm.slane %v1143_v40, 5 }
 0x180   :  { %v294_v30 = vmul.f32 %v1149_v24, %v1149_v24  ;;  %v296_v31 = vmul.f32 %v1151_v25, %v1151_v25  ;;  %v287_v32 = vadd.f32 %v286_v26, %v285_v20 }
 0x181   :  { %499 = vmatpush.bf16.msrb.mxu0 %v877_v47 }
 0x182   :  { %v298_v36 = vadd.f32 %v296_v31, %v294_v30  ;;  %v289_v37 = vmul.f32 0.0625, %v287_v32 }
 0x184   :  { %v299_v42 = vrot.slane %v298_v36, 4  ;;  %v1157_v43 = vsub.f32 %v271_v56, %v289_v37  ;;  %v1159_v44 = vsub.f32 %v273_v58, %v289_v37  ;;  %v872_v56 = vld [vmem:[#allocation4 + $0x140] sm:$0xf] }
 0x185   :  { %v873_v58 = vor.u32 %v986_v57, %v872_v56 }
 0x186   :  { %v300_v48 = vadd.f32 %v299_v42, %v298_v36  ;;  %v295_v49 = vmul.f32 %v1157_v43, %v1157_v43  ;;  %v297_v50 = vmul.f32 %v1159_v44, %v1159_v44 }
 0x187   :  { %500 = vmatpush.bf16.msrb.mxu0 %v873_v58 }
 0x188   :  { %v301_v54 = vrot.slane %v300_v48, 2  ;;  %v305_v55 = vadd.f32 %v297_v50, %v295_v49 }
 0x18a   :  { %v302_v59 = vadd.f32 %v301_v54, %v300_v48  ;;  %v306_v60 = vrot.slane %v305_v55, 4 }
 0x18b   :  { %501 = vmatpush.bf16.msrb.mxu0 %v869_v4 }
 0x18c   :  { %v303_v0 = vrot.slane %v302_v59, 1  ;;  %v307_v1 = vadd.f32 %v306_v60, %v305_v55 }
 0x18e   :  { %v304_v5 = vadd.f32 %v303_v0, %v302_v59  ;;  %v308_v6 = vrot.slane %v307_v1, 2 }
 0x18f   :  { %502 = vmatpush.bf16.msrb.mxu0 %v865_v12  ;;  %v912_v12 = vld [vmem:[#allocation4 + $0xe4] sm:$0xf] }
 0x190   :  { %v312_v7 = vmul.f32 0.0625, %v304_v5  ;;  %v309_v8 = vadd.f32 %v308_v6, %v307_v1  ;;  %v920_v1 = vld [vmem:[#allocation4 + $0x104] sm:$0xf]  ;;  %v916_v6 = vld [vmem:[#allocation4 + $0xf4] sm:$0xf] }
 0x191   :  { %v921_v3 = vor.u32 %v998_v2, %v920_v1  ;;  %v956_v1 = vld [vmem:[#allocation4 + $0x194] sm:$0xf] }
 0x192   :  { %v314_v13 = vadd.f32 1e-05, %v312_v7  ;;  %v310_v14 = vrot.slane %v309_v8, 1  ;;  %v997_v7 = vld [vmem:[#allocation4 + $0xf8] sm:$0xf0] }
 0x194   :  { %1017 = vrsqrt.f32 %v314_v13  ;;  %v311_v15 = vadd.f32 %v310_v14, %v309_v8  ;;  %vm322_vm5 = vweird.f32 %v314_v13  ;;  %v917_v8 = vor.u32 %v997_v7, %v916_v6  ;;  %v1006_v6 = vld [vmem:[#allocation4 + $0x188] sm:$0xf0] }
 0x196   :  { %v313_v16 = vmul.f32 0.0625, %v311_v15 }
 0x198   :  { %v315_v17 = vadd.f32 1e-05, %v313_v16 }
 0x19a   :  { %v1018_v18 = vpop.eup %1017  ;;  %1019 = vrsqrt.f32 %v315_v17  ;;  %vm332_vm8 = vweird.f32 %v315_v17 }
 0x19b   :  { %v317_v19 = vmul.f32 %v1018_v18, %v314_v13  ;;  %vm323_vm4 = vweird.f32 %v1018_v18  ;;  %v996_v13 = vld [vmem:[#allocation4 + $0xe8] sm:$0xf0] }
 0x19c   :  { %vm324_vm6 = vmor %vm322_vm5, %vm323_vm4  ;;  %v913_v14 = vor.u32 %v996_v13, %v912_v12  ;;  %v1005_v12 = vld [vmem:[#allocation4 + $0x178] sm:$0xf0] }
 0x19d   :  { %v318_v20 = vmul.f32 %v1018_v18, %v317_v19  ;;  %v995_v19 = vld [vmem:[#allocation4 + $0xd8] sm:$0xf0] }
 0x19f   :  { %v319_v21 = vmul.f32 0.5, %v318_v20 }
 0x1a0   :  { %v1020_v22 = vpop.eup %1019 }
 0x1a1   :  { %v320_v23 = vsub.f32 1.5, %v319_v21  ;;  %v327_v26 = vmul.f32 %v1020_v22, %v315_v17  ;;  %vm333_vm7 = vweird.f32 %v1020_v22 }
 0x1a2   :  { %vm334_vm9 = vmor %vm332_vm8, %vm333_vm7 }
 0x1a3   :  { %v321_v27 = vmul.f32 %v1018_v18, %v320_v23  ;;  %v328_v28 = vmul.f32 %v1020_v22, %v327_v26  ;;  %v904_v26 = vld [vmem:[#allocation4 + $0xc4] sm:$0xf] }
 0x1a5   :  { %v325_v29 = vsel %vm324_vm6, %v1018_v18, %v321_v27  ;;  %v329_v30 = vmul.f32 0.5, %v328_v28  ;;  %v908_v18 = vld [vmem:[#allocation4 + $0xd4] sm:$0xf]  ;;  %v994_v27 = vld [vmem:[#allocation4 + $0xc8] sm:$0xf0] }
 0x1a6   :  { %v336_v31 = vmul.f32 %v325_v29, %v1137_v9  ;;  %v909_v20 = vor.u32 %v995_v19, %v908_v18  ;;  %v905_v28 = vor.u32 %v994_v27, %v904_v26 }
 0x1a7   :  { %v330_v32 = vsub.f32 1.5, %v329_v30 }
 0x1a8   :  { %v338_v33 = vperm.slane %v336_v31, 4  ;;  %v900_v31 = vld [vmem:[#allocation4 + $0xb4] sm:$0xf] }
 0x1a9   :  { %v331_v35 = vmul.f32 %v1020_v22, %v330_v32  ;;  %v993_v32 = vld [vmem:[#allocation4 + $0xb8] sm:$0xf0] }
 0x1aa   :  { %v342_v36 = vmul.f32 %v338_v33, %v1151_v25  ;;  %v340_v37 = vmul.f32 %v338_v33, %v1149_v24  ;;  %v901_v33 = vor.u32 %v993_v32, %v900_v31  ;;  %v1002_v31 = vld [vmem:[#allocation4 + $0x148] sm:$0xf0] }
 0x1ab   :  { %v335_v38 = vsel %vm334_vm9, %v1020_v22, %v331_v35 }
 0x1ac   :  { %v337_v39 = vmul.f32 %v335_v38, %v1143_v40  ;;  %v346_v41 = vadd.f32 %v344_v34, %v340_v37  ;;  %v348_v42 = vadd.f32 %v344_v34, %v342_v36  ;;  %v896_v36 = vld [vmem:[#allocation4 + $0xa4] sm:$0xf]  ;;  %v992_v37 = vld [vmem:[#allocation4 + $0xa8] sm:$0xf0] }
 0x1ad   :  { %v897_v38 = vor.u32 %v992_v37, %v896_v36  ;;  %v1001_v36 = vld [vmem:[#allocation4 + $0x138] sm:$0xf0] }
 0x1ae   :  { %v339_v46 = vperm.slane %v337_v39, 4  ;;  %v382_v47 = vpack.c.bf16 %v348_v42, %v346_v41 }
 0x1b0   :  { %v343_v48 = vmul.f32 %v339_v46, %v1159_v44  ;;  %489 = vmatmul.bf16.vlgmr.msra.gmra.mxu3 %v382_v47  ;;  %v341_v49 = vmul.f32 %v339_v46, %v1157_v43  ;;  %v925_v43 = vor.u32 %v999_v62, %v924_v61 }
 0x1b2   :  { %v347_v50 = vadd.f32 %v345_v45, %v341_v49  ;;  %v349_v51 = vadd.f32 %v345_v45, %v343_v48  ;;  %615 = vmatpush.bf16.msrb.mxu1 %v925_v43 }
 0x1b4   :  { %v383_v25 = vpack.c.bf16 %v349_v51, %v347_v50 }
 0x1b6   :  { %503 = vmatmul.bf16.vlgmr.msrb.gmra.mxu0 %v383_v25  ;;  %616 = vmatpush.bf16.msrb.mxu1 %v921_v3 }
 0x1ba   :  { %617 = vmatpush.bf16.msrb.mxu1 %v917_v8 }
 0x1be   :  { %618 = vmatpush.bf16.msrb.mxu1 %v913_v14 }
 0x1c2   :  { %619 = vmatpush.bf16.msrb.mxu1 %v909_v20 }
 0x1c6   :  { %620 = vmatpush.bf16.msrb.mxu1 %v905_v28 }
 0x1ca   :  { %621 = vmatpush.bf16.msrb.mxu1 %v901_v33 }
 0x1ce   :  { %622 = vmatpush.bf16.msrb.mxu1 %v897_v38 }
 0x233   :  { %v490_v52 = vpop.f32.mrf.mxu3  ;;  %v504_v24 = vpop.f32.mrf.mxu0 }
 0x234   :  { %v491_v54 = vadd.f32 %v490_v52, %v384_v53  ;;  %v1174_v52 = vld [vmem:[#allocation6 + $0x10] sm:$0xff] }
 0x236   :  { %v505_v56 = vadd.f32 %v504_v24, %v491_v54  ;;  %v546_v54 = vperm.slane %v1174_v52, 0 }
 0x238   :  { %v509_v59 = vmax.f32 %v505_v56, 0.0 }
 0x23b   :  { %v492_v55 = vpop.f32.mrf.mxu3  ;;  %v506_v40 = vpop.f32.mrf.mxu0 }
 0x23c   :  { %v493_v57 = vadd.f32 %v492_v55, %v384_v53 }
 0x23e   :  { %v507_v58 = vadd.f32 %v506_v40, %v493_v57 }
 0x240   :  { %v510_v60 = vmax.f32 %v507_v58, 0.0 }
 0x242   :  { %v511_v44 = vadd.f32 %v510_v60, %v509_v59 }
 0x244   :  { %v512_v63 = vrot.slane %v511_v44, 4 }
 0x246   :  { %v513_v0 = vadd.f32 %v512_v63, %v511_v44 }
 0x248   :  { %v514_v4 = vrot.slane %v513_v0, 2 }
 0x24a   :  { %v515_v5 = vadd.f32 %v514_v4, %v513_v0 }
 0x24c   :  { %v516_v10 = vrot.slane %v515_v5, 1 }
 0x24e   :  { %v517_v11 = vadd.f32 %v516_v10, %v515_v5  ;;  %v952_v5 = vld [vmem:[#allocation4 + $0x184] sm:$0xf] }
 0x24f   :  { %v953_v7 = vor.u32 %v1006_v6, %v952_v5 }
 0x250   :  { %v518_v15 = vmul.f32 0.0625, %v517_v11  ;;  %v948_v11 = vld [vmem:[#allocation4 + $0x174] sm:$0xf] }
 0x251   :  { %v949_v13 = vor.u32 %v1005_v12, %v948_v11 }
 0x252   :  { %v519_v16 = vsub.f32 %v509_v59, %v518_v15  ;;  %v520_v17 = vsub.f32 %v510_v60, %v518_v15  ;;  %v566_v60 = vperm.slane %v1174_v52, 1 }
 0x254   :  { %v521_v21 = vmul.f32 %v519_v16, %v519_v16  ;;  %v522_v22 = vmul.f32 %v520_v17, %v520_v17 }
 0x256   :  { %v523_v23 = vadd.f32 %v522_v22, %v521_v21  ;;  %v940_v22 = vld [vmem:[#allocation4 + $0x154] sm:$0xf] }
 0x258   :  { %v524_v29 = vrot.slane %v523_v23, 4 }
 0x25a   :  { %v525_v30 = vadd.f32 %v524_v29, %v523_v23  ;;  %v1003_v23 = vld [vmem:[#allocation4 + $0x158] sm:$0xf0] }
 0x25b   :  { %v941_v26 = vor.u32 %v1003_v23, %v940_v22 }
 0x25c   :  { %v526_v34 = vrot.slane %v525_v30, 2 }
 0x25e   :  { %v527_v35 = vadd.f32 %v526_v34, %v525_v30  ;;  %v936_v30 = vld [vmem:[#allocation4 + $0x144] sm:$0xf] }
 0x25f   :  { %v937_v32 = vor.u32 %v1002_v31, %v936_v30 }
 0x260   :  { %v528_v39 = vrot.slane %v527_v35, 1 }
 0x262   :  { %v529_v41 = vadd.f32 %v528_v39, %v527_v35  ;;  %v932_v35 = vld [vmem:[#allocation4 + $0x134] sm:$0xf] }
 0x263   :  { %v933_v37 = vor.u32 %v1001_v36, %v932_v35 }
 0x264   :  { %v530_v42 = vmul.f32 0.0625, %v529_v41  ;;  %v928_v41 = vld [vmem:[#allocation4 + $0x124] sm:$0xf] }
 0x266   :  { %v531_v45 = vadd.f32 1e-05, %v530_v42  ;;  %v1000_v42 = vld [vmem:[#allocation4 + $0x128] sm:$0xf0] }
 0x268   :  { %1021 = vrsqrt.f32 %v531_v45  ;;  %vm538_vm11 = vweird.f32 %v531_v45 }
 0x26e   :  { %v1022_v46 = vpop.eup %1021 }
 0x26f   :  { %v533_v47 = vmul.f32 %v1022_v46, %v531_v45  ;;  %vm539_vm10 = vweird.f32 %v1022_v46  ;;  %v929_v45 = vor.u32 %v1000_v42, %v928_v41 }
 0x270   :  { %vm540_vm12 = vmor %vm538_vm11, %vm539_vm10 }
 0x271   :  { %v534_v48 = vmul.f32 %v1022_v46, %v533_v47 }
 0x273   :  { %v535_v49 = vmul.f32 0.5, %v534_v48 }
 0x275   :  { %v536_v50 = vsub.f32 1.5, %v535_v49 }
 0x277   :  { %v537_v51 = vmul.f32 %v1022_v46, %v536_v50 }
 0x279   :  { %v541_v25 = vsel %vm540_vm12, %v1022_v46, %v537_v51 }
 0x27a   :  { %v542_v24 = vmul.f32 %v541_v25, %v1137_v9  ;;  %v1007_v9 = vld [vmem:[#allocation4 + $0x198] sm:$0xf0] }
 0x27b   :  { %v957_v2 = vor.u32 %v1007_v9, %v956_v1 }
 0x27c   :  { %v543_v53 = vperm.slane %v542_v24, 7 }
 0x27d   :  { %735 = vmatpush.bf16.msrb.mxu2 %v957_v2 }
 0x27e   :  { %v545_v55 = vmul.f32 %v543_v53, %v520_v17  ;;  %v544_v56 = vmul.f32 %v543_v53, %v519_v16  ;;  %v944_v16 = vld [vmem:[#allocation4 + $0x164] sm:$0xf]  ;;  %v1004_v17 = vld [vmem:[#allocation4 + $0x168] sm:$0xf0] }
 0x27f   :  { %v945_v18 = vor.u32 %v1004_v17, %v944_v16 }
 0x280   :  { %v547_v57 = vadd.f32 %v546_v54, %v544_v56  ;;  %v548_v40 = vadd.f32 %v546_v54, %v545_v55 }
 0x281   :  { %736 = vmatpush.bf16.msrb.mxu2 %v953_v7 }
 0x282   :  { %v565_v58 = vpack.c.bf16 %v548_v40, %v547_v57  ;;  %v666_v40 = vperm.slane %v1174_v52, 3 }
 0x284   :  { %623 = vmatmul.bf16.vlgmr.msrb.gmra.mxu1 %v565_v58 }
 0x285   :  { %737 = vmatpush.bf16.msrb.mxu2 %v949_v13 }
 0x289   :  { %738 = vmatpush.bf16.msrb.mxu2 %v945_v18 }
 0x28d   :  { %739 = vmatpush.bf16.msrb.mxu2 %v941_v26 }
 0x291   :  { %740 = vmatpush.bf16.msrb.mxu2 %v937_v32 }
 0x295   :  { %741 = vmatpush.bf16.msrb.mxu2 %v933_v37 }
 0x299   :  { %742 = vmatpush.bf16.msrb.mxu2 %v929_v45 }
 0x301   :  { %v624_v59 = vpop.f32.mrf.mxu1 }
 0x302   :  { %v625_v44 = vadd.f32 %v624_v59, %v566_v60 }
 0x304   :  { %v629_v43 = vmax.f32 %v625_v44, 0.0 }
 0x309   :  { %v626_v61 = vpop.f32.mrf.mxu1 }
 0x30a   :  { %v627_v62 = vadd.f32 %v626_v61, %v566_v60 }
 0x30c   :  { %v630_v63 = vmax.f32 %v627_v62, 0.0  ;;  %v686_v62 = vperm.slane %v1174_v52, 4 }
 0x30e   :  { %v631_v0 = vadd.f32 %v630_v63, %v629_v43 }
 0x310   :  { %v632_v3 = vrot.slane %v631_v0, 4 }
 0x312   :  { %v633_v4 = vadd.f32 %v632_v3, %v631_v0 }
 0x314   :  { %v634_v8 = vrot.slane %v633_v4, 2 }
 0x316   :  { %v635_v10 = vadd.f32 %v634_v8, %v633_v4 }
 0x318   :  { %v636_v14 = vrot.slane %v635_v10, 1 }
 0x31a   :  { %v637_v15 = vadd.f32 %v636_v14, %v635_v10 }
 0x31c   :  { %v638_v19 = vmul.f32 0.0625, %v637_v15 }
 0x31e   :  { %v639_v20 = vsub.f32 %v629_v43, %v638_v19  ;;  %v640_v21 = vsub.f32 %v630_v63, %v638_v19 }
 0x320   :  { %v641_v27 = vmul.f32 %v639_v20, %v639_v20  ;;  %v642_v28 = vmul.f32 %v640_v21, %v640_v21 }
 0x322   :  { %v643_v29 = vadd.f32 %v642_v28, %v641_v27 }
 0x324   :  { %v644_v33 = vrot.slane %v643_v29, 4 }
 0x326   :  { %v645_v34 = vadd.f32 %v644_v33, %v643_v29 }
 0x328   :  { %v646_v38 = vrot.slane %v645_v34, 2 }
 0x32a   :  { %v647_v39 = vadd.f32 %v646_v38, %v645_v34 }
 0x32c   :  { %v648_v46 = vrot.slane %v647_v39, 1 }
 0x32e   :  { %v649_v47 = vadd.f32 %v648_v46, %v647_v39 }
 0x330   :  { %v650_v48 = vmul.f32 0.0625, %v649_v47 }
 0x332   :  { %v651_v49 = vadd.f32 1e-05, %v650_v48 }
 0x334   :  { %1023 = vrsqrt.f32 %v651_v49  ;;  %vm658_vm14 = vweird.f32 %v651_v49 }
 0x33a   :  { %v1024_v50 = vpop.eup %1023 }
 0x33b   :  { %v653_v51 = vmul.f32 %v1024_v50, %v651_v49  ;;  %vm659_vm13 = vweird.f32 %v1024_v50 }
 0x33c   :  { %vm660_vm15 = vmor %vm658_vm14, %vm659_vm13 }
 0x33d   :  { %v654_v25 = vmul.f32 %v1024_v50, %v653_v51 }
 0x33f   :  { %v655_v24 = vmul.f32 0.5, %v654_v25 }
 0x341   :  { %v656_v53 = vsub.f32 1.5, %v655_v24 }
 0x343   :  { %v657_v54 = vmul.f32 %v1024_v50, %v656_v53 }
 0x345   :  { %v661_v55 = vsel %vm660_vm15, %v1024_v50, %v657_v54 }
 0x346   :  { %v662_v56 = vmul.f32 %v661_v55, %v1174_v52 }
 0x348   :  { %v663_v57 = vperm.slane %v662_v56, 2 }
 0x34a   :  { %v665_v58 = vmul.f32 %v663_v57, %v640_v21  ;;  %v664_v59 = vmul.f32 %v663_v57, %v639_v20 }
 0x34c   :  { %v667_v60 = vadd.f32 %v666_v40, %v664_v59  ;;  %v668_v44 = vadd.f32 %v666_v40, %v665_v58 }
 0x34e   :  { %v685_v61 = vpack.c.bf16 %v668_v44, %v667_v60 }
 0x350   :  { %743 = vmatmul.bf16.vlgmr.msrb.gmra.mxu2 %v685_v61 }
 0x3d3   :  { %v744_v43 = vpop.f32.mrf.mxu2 }
 0x3d4   :  { %v745_v63 = vadd.f32 %v744_v43, %v686_v62 }
 0x3d6   :  { %749 = vst [vmem:[%s1191_s3] sm:$0xff] %v745_v63 }
 0x3db   :  { %v746_v0 = vpop.f32.mrf.mxu2 }
 0x3dc   :  { %v747_v1 = vadd.f32 %v746_v0, %v686_v62 }
 0x3de   :  { %750 = vst [vmem:[%s1191_s3 + $0x8] sm:$0xff] %v747_v1 }
 0x3df   :  { %755 = vsyncpa [#allocation3], 1 }
 0x3e0   :  { %756 = vsyncpa [#allocation5], 1 }

</bundles_post_ra>
